<compile_context>
chip_gen: v7x
topology: tpu7x:2x2x1
jax: 0.10.0
libtpu: 0.0.40
codegen_flags: <defaults>
</compile_context>

<pallas_src>
import functools

import jax
import jax.numpy as jnp
from jax.experimental import pallas as pl
from jax.experimental.pallas import tpu as pltpu


# ----------------------------- Pallas kernel --------------------------------


def _basic_block_kernel(*refs, stride, cin, planes, ho, wo, nb, has_sc, is_last):
    """Fused BasicBlock forward for NB images, (C, NB*Ho*Wo) lane-dense layout."""
    it = iter(refs)
    x_ref = next(it)     # stride==1: (nb,cin,hw) f32 | else (nb,stride,3*cin,hr*wo) bf16
    w1g_ref = next(it)   # (3, planes, 3*cin)   bf16, bn1 scale folded in
    w2g_ref = next(it)   # (3, planes, 3*planes) bf16, bn2 scale folded in
    bias_ref = next(it)  # (3, planes, 1) f32 folded BN biases [bn1, bn2, bn_sc]
    mask_ref = next(it)  # (4, nb*hw) bf16: [col!=0, col!=wo-1, row!=0, row!=ho-1]
    wsc_ref = next(it) if has_sc else None   # (planes, cin) bf16, bn_sc scale folded
    out_ref = next(it)   # (1, planes, nb*hw) f32
    pre_ref = next(it) if is_last else None  # (1, planes, nb*hw) f32
    hx_ref = next(it) if stride == 1 else None     # (3*cin,   2*wo+nb*hw) bf16 scratch
    h3_ref = next(it)                              # (3*planes, 2*wo+nb*hw) bf16 scratch
    needs_xs = (stride != 1) or (not has_sc)
    xs_ref = next(it) if needs_xs else None        # shortcut-input staging scratch

    f32, bf16 = jnp.float32, jnp.bfloat16
    hw = ho * wo
    bhw = nb * hw
    P, C = planes, cin

    m_l1 = mask_ref[0:1, 0:hw]    # per-image W masks (pattern is hw-periodic)
    m_r1 = mask_ref[1:2, 0:hw]
    m_lB = mask_ref[0:1, :]       # batched masks over all nb images
    m_rB = mask_ref[1:2, :]
    m_top = mask_ref[2:3, :]
    m_bot = mask_ref[3:4, :]

    # ---- conv1 (bn1 scale folded) + bias + relu --------------------------------
    if stride == 1:
        # Zero the pad columns (everything else is fully rewritten below).
        hx_ref[:, 0:wo + 1] = jnp.zeros((3 * C, wo + 1), bf16)
        hx_ref[:, wo + bhw - 1:2 * wo + bhw] = jnp.zeros((3 * C, wo + 1), bf16)
        # Stage three W-shifted bf16 copies of x (images concatenated on lanes).
        for b in range(nb):
            xb = x_ref[b]                                   # (cin, hw) f32
            xbb = xb.astype(bf16)
            o = wo + b * hw
            hx_ref[0 * C:1 * C, o + 1:o + 1 + hw] = xbb * m_r1   # kw = 0 taps
            hx_ref[1 * C:2 * C, o:o + hw] = xbb                  # kw = 1 taps
            hx_ref[2 * C:3 * C, o - 1:o - 1 + hw] = xbb * m_l1   # kw = 2 taps
            if not has_sc:                  # keep an f32 copy for the identity add
                xs_ref[:, b * hw:(b + 1) * hw] = xb
        acc1 = None
        for kh in range(3):
            taps = hx_ref[:, kh * wo:kh * wo + bhw]         # (3*cin, bhw) bf16
            if nb > 1 and kh == 0:
                taps = taps * m_top          # zero cross-image bleed at row 0
            if nb > 1 and kh == 2:
                taps = taps * m_bot          # zero cross-image bleed at row ho-1
            d = jnp.dot(w1g_ref[kh], taps, preferred_element_type=f32)
            acc1 = d if acc1 is None else acc1 + d
        out1b = jnp.maximum(acc1 + bias_ref[0], 0.0).astype(bf16)   # (planes, bhw)

        # Stage conv2 taps from out1 (same shifted-copy trick, whole-slab writes).
        h3_ref[:, 0:wo + 1] = jnp.zeros((3 * P, wo + 1), bf16)
        h3_ref[:, wo + bhw - 1:2 * wo + bhw] = jnp.zeros((3 * P, wo + 1), bf16)
        h3_ref[0 * P:1 * P, wo + 1:wo + 1 + bhw] = out1b * m_rB
        h3_ref[1 * P:2 * P, wo:wo + bhw] = out1b
        h3_ref[2 * P:3 * P, wo - 1:wo - 1 + bhw] = out1b * m_lB
    else:
        # Strided conv1 per image straight from the stride-phase tap planes,
        # staged into h3 so conv2 runs batched over all nb images.
        h3_ref[:, 0:wo + 1] = jnp.zeros((3 * P, wo + 1), bf16)
        h3_ref[:, wo + bhw - 1:2 * wo + bhw] = jnp.zeros((3 * P, wo + 1), bf16)
        a_sc, dh_sc = 1 % stride, 1 // stride
        for b in range(nb):
            acc1 = None
            for kh in range(3):
                a, dh = kh % stride, kh // stride
                taps = x_ref[b, a, :, dh * wo:dh * wo + hw]    # (3*cin, hw) bf16
                d = jnp.dot(w1g_ref[kh], taps, preferred_element_type=f32)
                acc1 = d if acc1 is None else acc1 + d
            out1b = jnp.maximum(acc1 + bias_ref[0], 0.0).astype(bf16)  # (planes, hw)
            o = wo + b * hw
            h3_ref[0 * P:1 * P, o + 1:o + 1 + hw] = out1b * m_r1
            h3_ref[1 * P:2 * P, o:o + hw] = out1b
            h3_ref[2 * P:3 * P, o - 1:o - 1 + hw] = out1b * m_l1
            # 1x1-conv shortcut input x[:, ::s, ::s], lane-concatenated via scratch.
            xs_ref[:, b * hw:(b + 1) * hw] = x_ref[b, a_sc, C:2 * C,
                                                   dh_sc * wo:dh_sc * wo + hw]

    # ---- conv2 (bn2 scale folded): 3 batched dots on the staged taps -----------
    acc2 = None
    for kh in range(3):
        taps = h3_ref[:, kh * wo:kh * wo + bhw]              # (3*planes, bhw) bf16
        if nb > 1 and kh == 0:
            taps = taps * m_top
        if nb > 1 and kh == 2:
            taps = taps * m_bot
        d = jnp.dot(w2g_ref[kh], taps, preferred_element_type=f32)
        acc2 = d if acc2 is None else acc2 + d

    # ---- shortcut ---------------------------------------------------------------
    if has_sc:
        if stride == 1:
            xsc = hx_ref[C:2 * C, wo:wo + bhw]               # unshifted x, bf16
        else:
            xsc = xs_ref[...]                                # (cin, bhw) bf16
        sc = jnp.dot(wsc_ref[...], xsc, preferred_element_type=f32) + bias_ref[2]
    else:
        sc = xs_ref[...]                                     # identity, f32

    # ---- bn2 bias + residual add + relu ----------------------------------------
    pre = acc2 + bias_ref[1] + sc
    out_ref[0] = jnp.maximum(pre, 0.0).astype(out_ref.dtype)
    if is_last:
        pre_ref[0] = pre.astype(pre_ref.dtype)


# ------------------------------- wrapper glue --------------------------------


def _fold_bn(gamma, beta, mean, var, eps=1e-5):
    scale = gamma / jnp.sqrt(var + eps)
    return scale, beta - mean * scale


def _group_conv_weight(w_oihw):
    # (Cout, Cin, 3, 3) -> (3, Cout, 3*Cin) with columns ordered (kw, cin).
    co, ci, kh, kw = w_oihw.shape
    return jnp.transpose(w_oihw, (2, 0, 3, 1)).reshape(kh, co, kw * ci)


def _prep_input(x_nchw, stride, ho, wo):
    """Rearrange x into tap-phase planes (only used for stride != 1).

    Plane [a, kw*Cin + ci, i*Wo + j] = xpad[ci, stride*i + a, stride*j + kw],
    so the conv1 tap group for kh is a contiguous column slice of one plane.
    """
    n, ci, h, w = x_nchw.shape
    hr = ho + (3 + stride - 1) // stride - 1
    xp = jnp.pad(x_nchw, ((0, 0), (0, 0), (1, 1), (1, 1)))
    phases = []
    for a in range(stride):
        rows = xp[:, :, a: a + stride * (hr - 1) + 1: stride, :]       # (N,Ci,HR,W+2)
        cols = [rows[:, :, :, kw: kw + stride * (wo - 1) + 1: stride]  # (N,Ci,HR,Wo)
                for kw in range(3)]
        phases.append(jnp.concatenate(cols, axis=1).reshape(n, 3 * ci, hr * wo))
    return jnp.stack(phases, axis=1)


def _pick_images_per_step(n, hw, planes):
    """Images per grid step: aim for >=512 lanes, keep f32 accumulators modest."""
    target = -(-512 // hw)                               # ceil(512 / hw)
    cap = max(1, (128 * 1024) // (4 * planes * hw))      # ~<=128 KiB per f32 map
    b = max(1, min(n, target, cap))
    while n % b:
        b -= 1
    return b


def basic_block_forward(x_nchw, params, *, stride, is_last):
    x = x_nchw.astype(jnp.float32)
    n, cin, h, w = x.shape
    planes = params["w1"].shape[0]
    ho = (h + 2 - 3) // stride + 1
    wo = (w + 2 - 3) // stride + 1
    hw = ho * wo
    has_sc = (stride != 1) or (cin != planes)
    nb = _pick_images_per_step(n, hw, planes)
    g = n // nb
    bhw = nb * hw

    s1, b1 = _fold_bn(params["bn1_g"], params["bn1_b"], params["bn1_m"], params["bn1_v"])
    s2, b2 = _fold_bn(params["bn2_g"], params["bn2_b"], params["bn2_m"], params["bn2_v"])
    if has_sc:
        ss, bs = _fold_bn(params["bns_g"], params["bns_b"], params["bns_m"], params["bns_v"])
    else:
        ss, bs = jnp.ones((planes,), jnp.float32), jnp.zeros((planes,), jnp.float32)

    # Fold BN scales into the conv weights host-side; only biases go in-kernel.
    w1g = _group_conv_weight(params["w1"] * s1[:, None, None, None]).astype(jnp.bfloat16)
    w2g = _group_conv_weight(params["w2"] * s2[:, None, None, None]).astype(jnp.bfloat16)
    bias = jnp.stack([b1, b2, bs]).astype(jnp.float32).reshape(3, planes, 1)

    col = jnp.arange(bhw, dtype=jnp.int32) % wo
    row = (jnp.arange(bhw, dtype=jnp.int32) // wo) % ho
    masks = jnp.stack([(col != 0), (col != wo - 1),
                       (row != 0), (row != ho - 1)]).astype(jnp.bfloat16)   # (4, bhw)

    kern = functools.partial(
        _basic_block_kernel, stride=stride, cin=cin, planes=planes,
        ho=ho, wo=wo, nb=nb, has_sc=has_sc, is_last=is_last)

    if stride == 1:
        # No wrapper-side expansion: flattened NCHW goes straight to the kernel.
        x_in = x.reshape(n, cin, h * w)
        x_spec = pl.BlockSpec((nb, cin, h * w), lambda i: (i, 0, 0))
    else:
        x_in = _prep_input(x, stride, ho, wo).astype(jnp.bfloat16)
        hrw = x_in.shape[-1]
        x_spec = pl.BlockSpec((nb, stride, 3 * cin, hrw), lambda i: (i, 0, 0, 0))

    in_specs = [
        x_spec,
        pl.BlockSpec((3, planes, 3 * cin), lambda i: (0, 0, 0)),
        pl.BlockSpec((3, planes, 3 * planes), lambda i: (0, 0, 0)),
        pl.BlockSpec((3, planes, 1), lambda i: (0, 0, 0)),
        pl.BlockSpec((4, bhw), lambda i: (0, 0)),
    ]
    inputs = [x_in, w1g, w2g, bias, masks]
    if has_sc:
        wsc = (params["ws"].reshape(planes, cin) * ss[:, None]).astype(jnp.bfloat16)
        in_specs.append(pl.BlockSpec((planes, cin), lambda i: (0, 0)))
        inputs.append(wsc)

    scratch = []
    if stride == 1:
        scratch.append(pltpu.VMEM((3 * cin, 2 * wo + bhw), jnp.bfloat16))      # conv1 taps
    scratch.append(pltpu.VMEM((3 * planes, 2 * wo + bhw), jnp.bfloat16))       # conv2 taps
    if stride != 1:
        scratch.append(pltpu.VMEM((cin, bhw), jnp.bfloat16))                   # 1x1 sc input
    elif not has_sc:
        scratch.append(pltpu.VMEM((planes, bhw), jnp.float32))                 # f32 identity

    out_spec = pl.BlockSpec((1, planes, bhw), lambda i: (i, 0, 0))
    if is_last:
        out_shape = (jax.ShapeDtypeStruct((g, planes, bhw), jnp.float32),
                     jax.ShapeDtypeStruct((g, planes, bhw), jnp.float32))
        out_specs = (out_spec, out_spec)
    else:  # skip the preact writeback entirely when it is not needed
        out_shape = jax.ShapeDtypeStruct((g, planes, bhw), jnp.float32)
        out_specs = out_spec

    result = pl.pallas_call(
        kern,
        out_shape=out_shape,
        grid=(g,),
        in_specs=in_specs,
        out_specs=out_specs,
        scratch_shapes=scratch,
        compiler_params=pltpu.CompilerParams(dimension_semantics=("parallel",)),
    )(*inputs)

    def to_nchw(t):  # (g, planes, nb*ho*wo) -> (n, planes, ho, wo)
        return (t.reshape(g, planes, nb, ho, wo)
                 .transpose(0, 2, 1, 3, 4)
                 .reshape(n, planes, ho, wo))

    if is_last:
        out, pre = result
        return to_nchw(out), to_nchw(pre)
    return to_nchw(result)


# ------------------------------ pure-JAX reference ---------------------------


def _reference(x, params, *, stride, eps=1e-5):
    def conv(a, w, s, pad):
        return jax.lax.conv_general_dilated(
            a, w, (s, s), [(pad, pad), (pad, pad)],
            dimension_numbers=("NCHW", "OIHW", "NCHW"))

    def bn(a, g, b, m, v):
        g, b, m, v = (t[None, :, None, None] for t in (g, b, m, v))
        return (a - m) / jnp.sqrt(v + eps) * g + b

    cin, planes = x.shape[1], params["w1"].shape[0]
    out = jax.nn.relu(bn(conv(x, params["w1"], stride, 1),
                         params["bn1_g"], params["bn1_b"], params["bn1_m"], params["bn1_v"]))
    out = bn(conv(out, params["w2"], 1, 1),
             params["bn2_g"], params["bn2_b"], params["bn2_m"], params["bn2_v"])
    if stride != 1 or cin != planes:
        sc = bn(conv(x, params["ws"], stride, 0),
                params["bns_g"], params["bns_b"], params["bns_m"], params["bns_v"])
    else:
        sc = x
    preact = out + sc
    return jax.nn.relu(preact), preact


# ----------------------------------- main ------------------------------------


def _q(t):
    # Round to bf16 and back so the f32 reference sees the same operand values
    # that the kernel feeds the MXU (accumulation stays f32 in both).
    return t.astype(jnp.bfloat16).astype(jnp.float32)


def _make_params(key, in_planes, planes, stride):
    ks = jax.random.split(key, 16)
    p = {
        "w1": _q(0.1 * jax.random.normal(ks[0], (planes, in_planes, 3, 3), jnp.float32)),
        "bn1_g": 1.0 + 0.1 * jax.random.normal(ks[1], (planes,), jnp.float32),
        "bn1_b": 0.1 * jax.random.normal(ks[2], (planes,), jnp.float32),
        "bn1_m": 0.1 * jax.random.normal(ks[3], (planes,), jnp.float32),
        "bn1_v": jax.random.uniform(ks[4], (planes,), jnp.float32, 0.5, 1.5),
        "w2": _q(0.1 * jax.random.normal(ks[5], (planes, planes, 3, 3), jnp.float32)),
        "bn2_g": 1.0 + 0.1 * jax.random.normal(ks[6], (planes,), jnp.float32),
        "bn2_b": 0.1 * jax.random.normal(ks[7], (planes,), jnp.float32),
        "bn2_m": 0.1 * jax.random.normal(ks[8], (planes,), jnp.float32),
        "bn2_v": jax.random.uniform(ks[9], (planes,), jnp.float32, 0.5, 1.5),
    }
    if stride != 1 or in_planes != planes:
        p.update({
            "ws": _q(0.1 * jax.random.normal(ks[10], (planes, in_planes, 1, 1), jnp.float32)),
            "bns_g": 1.0 + 0.1 * jax.random.normal(ks[11], (planes,), jnp.float32),
            "bns_b": 0.1 * jax.random.normal(ks[12], (planes,), jnp.float32),
            "bns_m": 0.1 * jax.random.normal(ks[13], (planes,), jnp.float32),
            "bns_v": jax.random.uniform(ks[14], (planes,), jnp.float32, 0.5, 1.5),
        })
    return p


if __name__ == "__main__":
    key = jax.random.PRNGKey(0)
    kx, kp1, kp2, kp3 = jax.random.split(key, 4)

    # Config A: stride-2 downsampling block with conv shortcut, is_last=True.
    N, Cin, H, W, planes, stride = 2, 4, 16, 16, 8, 2
    x = _q(jax.random.normal(kx, (N, Cin, H, W), jnp.float32))
    params_a = _make_params(kp1, Cin, planes, stride)
    out_a, pre_a = basic_block_forward(x, params_a, stride=stride, is_last=True)
    out_a = jax.block_until_ready(out_a)
    pre_a = jax.block_until_ready(pre_a)
    ref_out_a, ref_pre_a = _reference(x, params_a, stride=stride)
    assert jnp.allclose(out_a, ref_out_a, rtol=2e-2, atol=2e-2)
    assert jnp.allclose(pre_a, ref_pre_a, rtol=2e-2, atol=2e-2)

    # Config B: stride-1 identity-shortcut block, is_last=False.
    x_b = _q(jax.random.normal(kx, (N, planes, H, W), jnp.float32))
    params_b = _make_params(kp2, planes, planes, 1)
    out_b = basic_block_forward(x_b, params_b, stride=1, is_last=False)
    out_b = jax.block_until_ready(out_b)
    ref_out_b, _ = _reference(x_b, params_b, stride=1)
    assert jnp.allclose(out_b, ref_out_b, rtol=2e-2, atol=2e-2)

    # Config C: stride-1 block with channel-expanding 1x1 conv shortcut.
    params_c = _make_params(kp3, Cin, planes, 1)
    out_c = basic_block_forward(x, params_c, stride=1, is_last=False)
    out_c = jax.block_until_ready(out_c)
    ref_out_c, _ = _reference(x, params_c, stride=1)
    assert jnp.allclose(out_c, ref_out_c, rtol=2e-2, atol=2e-2)

    print("KERNEL_OK")
</pallas_src>

<mosaic_0001>
module attributes {stable_mosaic.version = 11 : i64} {
  func.func @_basic_block_kernel(%arg0: i32, %arg1: memref<2x2x12x72xbf16, #tpu.memory_space<vmem>>, %arg2: memref<3x8x12xbf16, #tpu.memory_space<vmem>>, %arg3: memref<3x8x24xbf16, #tpu.memory_space<vmem>>, %arg4: memref<3x8x1xf32, #tpu.memory_space<vmem>>, %arg5: memref<4x128xbf16, #tpu.memory_space<vmem>>, %arg6: memref<8x4xbf16, #tpu.memory_space<vmem>>, %arg7: memref<1x8x128xf32, #tpu.memory_space<vmem>>, %arg8: memref<1x8x128xf32, #tpu.memory_space<vmem>>, %arg9: memref<24x144xbf16, #tpu.memory_space<vmem>>, %arg10: memref<4x128xbf16, #tpu.memory_space<vmem>>) attributes {dimension_semantics = [#tpu.dimension_semantics<parallel>], iteration_bounds = array<i64: 1>, scalar_prefetch = 0 : i64, scratch_operands = 2 : i64, tpu.core_type = #tpu.core_type<tc>, window_params = [{transform_indices = @transform_0, window_bounds = array<i64: 2, 2, 12, 72>}, {pipeline_mode = #tpu.pipeline_mode<synchronous>, transform_indices = @transform_1, window_bounds = array<i64: 3, 8, 12>}, {pipeline_mode = #tpu.pipeline_mode<synchronous>, transform_indices = @transform_2, window_bounds = array<i64: 3, 8, 24>}, {pipeline_mode = #tpu.pipeline_mode<synchronous>, transform_indices = @transform_3, window_bounds = array<i64: 3, 8, 1>}, {pipeline_mode = #tpu.pipeline_mode<synchronous>, transform_indices = @transform_4, window_bounds = array<i64: 4, 128>}, {pipeline_mode = #tpu.pipeline_mode<synchronous>, transform_indices = @transform_5, window_bounds = array<i64: 8, 4>}, {transform_indices = @transform_6, window_bounds = array<i64: 1, 8, 128>}, {transform_indices = @transform_7, window_bounds = array<i64: 1, 8, 128>}]} {
    %c0 = arith.constant 0 : index
    %c0_0 = arith.constant 0 : index
    %0 = vector.load %arg5[%c0, %c0_0] : memref<4x128xbf16, #tpu.memory_space<vmem>>, vector<1x64xbf16>
    %c1 = arith.constant 1 : index
    %c0_1 = arith.constant 0 : index
    %1 = vector.load %arg5[%c1, %c0_1] : memref<4x128xbf16, #tpu.memory_space<vmem>>, vector<1x64xbf16>
    %c2 = arith.constant 2 : index
    %c0_2 = arith.constant 0 : index
    %2 = vector.load %arg5[%c2, %c0_2] : memref<4x128xbf16, #tpu.memory_space<vmem>>, vector<1x128xbf16>
    %c3 = arith.constant 3 : index
    %c0_3 = arith.constant 0 : index
    %3 = vector.load %arg5[%c3, %c0_3] : memref<4x128xbf16, #tpu.memory_space<vmem>>, vector<1x128xbf16>
    %cst = arith.constant 0.000000e+00 : bf16
    %4 = vector.broadcast %cst : bf16 to vector<24x9xbf16>
    %c0_4 = arith.constant 0 : index
    %c0_5 = arith.constant 0 : index
    %5 = vector.load %arg9[%c0_4, %c0_5] : memref<24x144xbf16, #tpu.memory_space<vmem>>, vector<24x9xbf16>
    tpu.vector_store %arg9[%c0_4, %c0_5], %4 {strides = array<i32>} : memref<24x144xbf16, #tpu.memory_space<vmem>>, vector<24x9xbf16>,
    %cst_6 = arith.constant 0.000000e+00 : bf16
    %6 = vector.broadcast %cst_6 : bf16 to vector<24x9xbf16>
    %c0_7 = arith.constant 0 : index
    %c135 = arith.constant 135 : index
    %7 = vector.load %arg9[%c0_7, %c135] : memref<24x144xbf16, #tpu.memory_space<vmem>>, vector<24x9xbf16>
    tpu.vector_store %arg9[%c0_7, %c135], %6 {strides = array<i32>} : memref<24x144xbf16, #tpu.memory_space<vmem>>, vector<24x9xbf16>,
    %c0_8 = arith.constant 0 : index
    %c0_9 = arith.constant 0 : index
    %c0_10 = arith.constant 0 : index
    %c0_11 = arith.constant 0 : index
    %8 = vector.load %arg1[%c0_8, %c0_9, %c0_10, %c0_11] : memref<2x2x12x72xbf16, #tpu.memory_space<vmem>>, vector<1x1x12x64xbf16>
    %9 = vector.shape_cast %8 : vector<1x1x12x64xbf16> to vector<12x64xbf16>
    %c0_12 = arith.constant 0 : index
    %c0_13 = arith.constant 0 : index
    %c0_14 = arith.constant 0 : index
    %10 = vector.load %arg2[%c0_12, %c0_13, %c0_14] : memref<3x8x12xbf16, #tpu.memory_space<vmem>>, vector<1x8x12xbf16>
    %11 = vector.shape_cast %10 : vector<1x8x12xbf16> to vector<8x12xbf16>
    %cst_15 = arith.constant dense<0.000000e+00> : vector<8x64xf32>
    %12 = tpu.matmul %11, %9, %cst_15 {dimension_numbers = #tpu.dot_dimension_numbers<[1], [0], [0], [1], [0, 0, 1, 1], [], []>} : vector<8x12xbf16>, vector<12x64xbf16>, vector<8x64xf32> -> vector<8x64xf32>
    %c0_16 = arith.constant 0 : index
    %c1_17 = arith.constant 1 : index
    %c0_18 = arith.constant 0 : index
    %c0_19 = arith.constant 0 : index
    %13 = vector.load %arg1[%c0_16, %c1_17, %c0_18, %c0_19] : memref<2x2x12x72xbf16, #tpu.memory_space<vmem>>, vector<1x1x12x64xbf16>
    %14 = vector.shape_cast %13 : vector<1x1x12x64xbf16> to vector<12x64xbf16>
    %c1_20 = arith.constant 1 : index
    %c0_21 = arith.constant 0 : index
    %c0_22 = arith.constant 0 : index
    %15 = vector.load %arg2[%c1_20, %c0_21, %c0_22] : memref<3x8x12xbf16, #tpu.memory_space<vmem>>, vector<1x8x12xbf16>
    %16 = vector.shape_cast %15 : vector<1x8x12xbf16> to vector<8x12xbf16>
    %cst_23 = arith.constant dense<0.000000e+00> : vector<8x64xf32>
    %17 = tpu.matmul %16, %14, %cst_23 {dimension_numbers = #tpu.dot_dimension_numbers<[1], [0], [0], [1], [0, 0, 1, 1], [], []>} : vector<8x12xbf16>, vector<12x64xbf16>, vector<8x64xf32> -> vector<8x64xf32>
    %18 = arith.addf %12, %17 : vector<8x64xf32>
    %c0_24 = arith.constant 0 : index
    %c0_25 = arith.constant 0 : index
    %c0_26 = arith.constant 0 : index
    %c8 = arith.constant 8 : index
    %19 = vector.load %arg1[%c0_24, %c0_25, %c0_26, %c8] : memref<2x2x12x72xbf16, #tpu.memory_space<vmem>>, vector<1x1x12x64xbf16>
    %20 = vector.shape_cast %19 : vector<1x1x12x64xbf16> to vector<12x64xbf16>
    %c2_27 = arith.constant 2 : index
    %c0_28 = arith.constant 0 : index
    %c0_29 = arith.constant 0 : index
    %21 = vector.load %arg2[%c2_27, %c0_28, %c0_29] : memref<3x8x12xbf16, #tpu.memory_space<vmem>>, vector<1x8x12xbf16>
    %22 = vector.shape_cast %21 : vector<1x8x12xbf16> to vector<8x12xbf16>
    %cst_30 = arith.constant dense<0.000000e+00> : vector<8x64xf32>
    %23 = tpu.matmul %22, %20, %cst_30 {dimension_numbers = #tpu.dot_dimension_numbers<[1], [0], [0], [1], [0, 0, 1, 1], [], []>} : vector<8x12xbf16>, vector<12x64xbf16>, vector<8x64xf32> -> vector<8x64xf32>
    %24 = arith.addf %18, %23 : vector<8x64xf32>
    %c0_31 = arith.constant 0 : index
    %c0_32 = arith.constant 0 : index
    %c0_33 = arith.constant 0 : index
    %25 = vector.load %arg4[%c0_31, %c0_32, %c0_33] : memref<3x8x1xf32, #tpu.memory_space<vmem>>, vector<1x8x1xf32>
    %26 = vector.shape_cast %25 : vector<1x8x1xf32> to vector<8x1xf32>
    %27 = vector.broadcast %26 : vector<8x1xf32> to vector<8x64xf32>
    %28 = arith.addf %24, %27 : vector<8x64xf32>
    %cst_34 = arith.constant 0.000000e+00 : f32
    %29 = vector.broadcast %cst_34 : f32 to vector<8x64xf32>
    %30 = arith.maximumf %28, %29 : vector<8x64xf32>
    %31 = arith.truncf %30 : vector<8x64xf32> to vector<8x64xbf16>
    %32 = vector.broadcast %1 : vector<1x64xbf16> to vector<8x64xbf16>
    %33 = arith.mulf %31, %32 : vector<8x64xbf16>
    %c0_35 = arith.constant 0 : index
    %c9 = arith.constant 9 : index
    %34 = vector.load %arg9[%c0_35, %c9] : memref<24x144xbf16, #tpu.memory_space<vmem>>, vector<8x64xbf16>
    tpu.vector_store %arg9[%c0_35, %c9], %33 {strides = array<i32>} : memref<24x144xbf16, #tpu.memory_space<vmem>>, vector<8x64xbf16>,
    %c8_36 = arith.constant 8 : index
    %c8_37 = arith.constant 8 : index
    %35 = vector.load %arg9[%c8_36, %c8_37] : memref<24x144xbf16, #tpu.memory_space<vmem>>, vector<8x64xbf16>
    tpu.vector_store %arg9[%c8_36, %c8_37], %31 {strides = array<i32>} : memref<24x144xbf16, #tpu.memory_space<vmem>>, vector<8x64xbf16>,
    %36 = vector.broadcast %0 : vector<1x64xbf16> to vector<8x64xbf16>
    %37 = arith.mulf %31, %36 : vector<8x64xbf16>
    %c16 = arith.constant 16 : index
    %c7 = arith.constant 7 : index
    %38 = vector.load %arg9[%c16, %c7] : memref<24x144xbf16, #tpu.memory_space<vmem>>, vector<8x64xbf16>
    tpu.vector_store %arg9[%c16, %c7], %37 {strides = array<i32>} : memref<24x144xbf16, #tpu.memory_space<vmem>>, vector<8x64xbf16>,
    %c0_38 = arith.constant 0 : index
    %c1_39 = arith.constant 1 : index
    %c4 = arith.constant 4 : index
    %c0_40 = arith.constant 0 : index
    %39 = vector.load %arg1[%c0_38, %c1_39, %c4, %c0_40] : memref<2x2x12x72xbf16, #tpu.memory_space<vmem>>, vector<1x1x4x64xbf16>
    %40 = vector.shape_cast %39 : vector<1x1x4x64xbf16> to vector<4x64xbf16>
    %c0_41 = arith.constant 0 : index
    %c0_42 = arith.constant 0 : index
    %41 = vector.load %arg10[%c0_41, %c0_42] : memref<4x128xbf16, #tpu.memory_space<vmem>>, vector<4x64xbf16>
    tpu.vector_store %arg10[%c0_41, %c0_42], %40 {strides = array<i32>} : memref<4x128xbf16, #tpu.memory_space<vmem>>, vector<4x64xbf16>,
    %c1_43 = arith.constant 1 : index
    %c0_44 = arith.constant 0 : index
    %c0_45 = arith.constant 0 : index
    %c0_46 = arith.constant 0 : index
    %42 = vector.load %arg1[%c1_43, %c0_44, %c0_45, %c0_46] : memref<2x2x12x72xbf16, #tpu.memory_space<vmem>>, vector<1x1x12x64xbf16>
    %43 = vector.shape_cast %42 : vector<1x1x12x64xbf16> to vector<12x64xbf16>
    %c0_47 = arith.constant 0 : index
    %c0_48 = arith.constant 0 : index
    %c0_49 = arith.constant 0 : index
    %44 = vector.load %arg2[%c0_47, %c0_48, %c0_49] : memref<3x8x12xbf16, #tpu.memory_space<vmem>>, vector<1x8x12xbf16>
    %45 = vector.shape_cast %44 : vector<1x8x12xbf16> to vector<8x12xbf16>
    %cst_50 = arith.constant dense<0.000000e+00> : vector<8x64xf32>
    %46 = tpu.matmul %45, %43, %cst_50 {dimension_numbers = #tpu.dot_dimension_numbers<[1], [0], [0], [1], [0, 0, 1, 1], [], []>} : vector<8x12xbf16>, vector<12x64xbf16>, vector<8x64xf32> -> vector<8x64xf32>
    %c1_51 = arith.constant 1 : index
    %c1_52 = arith.constant 1 : index
    %c0_53 = arith.constant 0 : index
    %c0_54 = arith.constant 0 : index
    %47 = vector.load %arg1[%c1_51, %c1_52, %c0_53, %c0_54] : memref<2x2x12x72xbf16, #tpu.memory_space<vmem>>, vector<1x1x12x64xbf16>
    %48 = vector.shape_cast %47 : vector<1x1x12x64xbf16> to vector<12x64xbf16>
    %c1_55 = arith.constant 1 : index
    %c0_56 = arith.constant 0 : index
    %c0_57 = arith.constant 0 : index
    %49 = vector.load %arg2[%c1_55, %c0_56, %c0_57] : memref<3x8x12xbf16, #tpu.memory_space<vmem>>, vector<1x8x12xbf16>
    %50 = vector.shape_cast %49 : vector<1x8x12xbf16> to vector<8x12xbf16>
    %cst_58 = arith.constant dense<0.000000e+00> : vector<8x64xf32>
    %51 = tpu.matmul %50, %48, %cst_58 {dimension_numbers = #tpu.dot_dimension_numbers<[1], [0], [0], [1], [0, 0, 1, 1], [], []>} : vector<8x12xbf16>, vector<12x64xbf16>, vector<8x64xf32> -> vector<8x64xf32>
    %52 = arith.addf %46, %51 : vector<8x64xf32>
    %c1_59 = arith.constant 1 : index
    %c0_60 = arith.constant 0 : index
    %c0_61 = arith.constant 0 : index
    %c8_62 = arith.constant 8 : index
    %53 = vector.load %arg1[%c1_59, %c0_60, %c0_61, %c8_62] : memref<2x2x12x72xbf16, #tpu.memory_space<vmem>>, vector<1x1x12x64xbf16>
    %54 = vector.shape_cast %53 : vector<1x1x12x64xbf16> to vector<12x64xbf16>
    %c2_63 = arith.constant 2 : index
    %c0_64 = arith.constant 0 : index
    %c0_65 = arith.constant 0 : index
    %55 = vector.load %arg2[%c2_63, %c0_64, %c0_65] : memref<3x8x12xbf16, #tpu.memory_space<vmem>>, vector<1x8x12xbf16>
    %56 = vector.shape_cast %55 : vector<1x8x12xbf16> to vector<8x12xbf16>
    %cst_66 = arith.constant dense<0.000000e+00> : vector<8x64xf32>
    %57 = tpu.matmul %56, %54, %cst_66 {dimension_numbers = #tpu.dot_dimension_numbers<[1], [0], [0], [1], [0, 0, 1, 1], [], []>} : vector<8x12xbf16>, vector<12x64xbf16>, vector<8x64xf32> -> vector<8x64xf32>
    %58 = arith.addf %52, %57 : vector<8x64xf32>
    %c0_67 = arith.constant 0 : index
    %c0_68 = arith.constant 0 : index
    %c0_69 = arith.constant 0 : index
    %59 = vector.load %arg4[%c0_67, %c0_68, %c0_69] : memref<3x8x1xf32, #tpu.memory_space<vmem>>, vector<1x8x1xf32>
    %60 = vector.shape_cast %59 : vector<1x8x1xf32> to vector<8x1xf32>
    %61 = vector.broadcast %60 : vector<8x1xf32> to vector<8x64xf32>
    %62 = arith.addf %58, %61 : vector<8x64xf32>
    %cst_70 = arith.constant 0.000000e+00 : f32
    %63 = vector.broadcast %cst_70 : f32 to vector<8x64xf32>
    %64 = arith.maximumf %62, %63 : vector<8x64xf32>
    %65 = arith.truncf %64 : vector<8x64xf32> to vector<8x64xbf16>
    %66 = vector.broadcast %1 : vector<1x64xbf16> to vector<8x64xbf16>
    %67 = arith.mulf %65, %66 : vector<8x64xbf16>
    %c0_71 = arith.constant 0 : index
    %c73 = arith.constant 73 : index
    %68 = vector.load %arg9[%c0_71, %c73] : memref<24x144xbf16, #tpu.memory_space<vmem>>, vector<8x64xbf16>
    tpu.vector_store %arg9[%c0_71, %c73], %67 {strides = array<i32>} : memref<24x144xbf16, #tpu.memory_space<vmem>>, vector<8x64xbf16>,
    %c8_72 = arith.constant 8 : index
    %c72 = arith.constant 72 : index
    %69 = vector.load %arg9[%c8_72, %c72] : memref<24x144xbf16, #tpu.memory_space<vmem>>, vector<8x64xbf16>
    tpu.vector_store %arg9[%c8_72, %c72], %65 {strides = array<i32>} : memref<24x144xbf16, #tpu.memory_space<vmem>>, vector<8x64xbf16>,
    %70 = vector.broadcast %0 : vector<1x64xbf16> to vector<8x64xbf16>
    %71 = arith.mulf %65, %70 : vector<8x64xbf16>
    %c16_73 = arith.constant 16 : index
    %c71 = arith.constant 71 : index
    %72 = vector.load %arg9[%c16_73, %c71] : memref<24x144xbf16, #tpu.memory_space<vmem>>, vector<8x64xbf16>
    tpu.vector_store %arg9[%c16_73, %c71], %71 {strides = array<i32>} : memref<24x144xbf16, #tpu.memory_space<vmem>>, vector<8x64xbf16>,
    %c1_74 = arith.constant 1 : index
    %c1_75 = arith.constant 1 : index
    %c4_76 = arith.constant 4 : index
    %c0_77 = arith.constant 0 : index
    %73 = vector.load %arg1[%c1_74, %c1_75, %c4_76, %c0_77] : memref<2x2x12x72xbf16, #tpu.memory_space<vmem>>, vector<1x1x4x64xbf16>
    %74 = vector.shape_cast %73 : vector<1x1x4x64xbf16> to vector<4x64xbf16>
    %c0_78 = arith.constant 0 : index
    %c64 = arith.constant 64 : index
    %75 = vector.load %arg10[%c0_78, %c64] : memref<4x128xbf16, #tpu.memory_space<vmem>>, vector<4x64xbf16>
    tpu.vector_store %arg10[%c0_78, %c64], %74 {strides = array<i32>} : memref<4x128xbf16, #tpu.memory_space<vmem>>, vector<4x64xbf16>,
    %c0_79 = arith.constant 0 : index
    %c0_80 = arith.constant 0 : index
    %76 = vector.load %arg9[%c0_79, %c0_80] : memref<24x144xbf16, #tpu.memory_space<vmem>>, vector<24x128xbf16>
    %77 = vector.broadcast %2 : vector<1x128xbf16> to vector<24x128xbf16>
    %78 = arith.mulf %76, %77 : vector<24x128xbf16>
    %c0_81 = arith.constant 0 : index
    %c0_82 = arith.constant 0 : index
    %c0_83 = arith.constant 0 : index
    %79 = vector.load %arg3[%c0_81, %c0_82, %c0_83] : memref<3x8x24xbf16, #tpu.memory_space<vmem>>, vector<1x8x24xbf16>
    %80 = vector.shape_cast %79 : vector<1x8x24xbf16> to vector<8x24xbf16>
    %cst_84 = arith.constant dense<0.000000e+00> : vector<8x128xf32>
    %81 = tpu.matmul %80, %78, %cst_84 {dimension_numbers = #tpu.dot_dimension_numbers<[1], [0], [0], [1], [0, 0, 1, 1], [], []>} : vector<8x24xbf16>, vector<24x128xbf16>, vector<8x128xf32> -> vector<8x128xf32>
    %c0_85 = arith.constant 0 : index
    %c8_86 = arith.constant 8 : index
    %82 = vector.load %arg9[%c0_85, %c8_86] : memref<24x144xbf16, #tpu.memory_space<vmem>>, vector<24x128xbf16>
    %c1_87 = arith.constant 1 : index
    %c0_88 = arith.constant 0 : index
    %c0_89 = arith.constant 0 : index
    %83 = vector.load %arg3[%c1_87, %c0_88, %c0_89] : memref<3x8x24xbf16, #tpu.memory_space<vmem>>, vector<1x8x24xbf16>
    %84 = vector.shape_cast %83 : vector<1x8x24xbf16> to vector<8x24xbf16>
    %cst_90 = arith.constant dense<0.000000e+00> : vector<8x128xf32>
    %85 = tpu.matmul %84, %82, %cst_90 {dimension_numbers = #tpu.dot_dimension_numbers<[1], [0], [0], [1], [0, 0, 1, 1], [], []>} : vector<8x24xbf16>, vector<24x128xbf16>, vector<8x128xf32> -> vector<8x128xf32>
    %86 = arith.addf %81, %85 : vector<8x128xf32>
    %c0_91 = arith.constant 0 : index
    %c16_92 = arith.constant 16 : index
    %87 = vector.load %arg9[%c0_91, %c16_92] : memref<24x144xbf16, #tpu.memory_space<vmem>>, vector<24x128xbf16>
    %88 = vector.broadcast %3 : vector<1x128xbf16> to vector<24x128xbf16>
    %89 = arith.mulf %87, %88 : vector<24x128xbf16>
    %c2_93 = arith.constant 2 : index
    %c0_94 = arith.constant 0 : index
    %c0_95 = arith.constant 0 : index
    %90 = vector.load %arg3[%c2_93, %c0_94, %c0_95] : memref<3x8x24xbf16, #tpu.memory_space<vmem>>, vector<1x8x24xbf16>
    %91 = vector.shape_cast %90 : vector<1x8x24xbf16> to vector<8x24xbf16>
    %cst_96 = arith.constant dense<0.000000e+00> : vector<8x128xf32>
    %92 = tpu.matmul %91, %89, %cst_96 {dimension_numbers = #tpu.dot_dimension_numbers<[1], [0], [0], [1], [0, 0, 1, 1], [], []>} : vector<8x24xbf16>, vector<24x128xbf16>, vector<8x128xf32> -> vector<8x128xf32>
    %93 = arith.addf %86, %92 : vector<8x128xf32>
    %c0_97 = arith.constant 0 : index
    %c0_98 = arith.constant 0 : index
    %94 = vector.load %arg10[%c0_97, %c0_98] : memref<4x128xbf16, #tpu.memory_space<vmem>>, vector<4x128xbf16>
    %c0_99 = arith.constant 0 : index
    %c0_100 = arith.constant 0 : index
    %95 = vector.load %arg6[%c0_99, %c0_100] : memref<8x4xbf16, #tpu.memory_space<vmem>>, vector<8x4xbf16>
    %cst_101 = arith.constant dense<0.000000e+00> : vector<8x128xf32>
    %96 = tpu.matmul %95, %94, %cst_101 {dimension_numbers = #tpu.dot_dimension_numbers<[1], [0], [0], [1], [0, 0, 1, 1], [], []>} : vector<8x4xbf16>, vector<4x128xbf16>, vector<8x128xf32> -> vector<8x128xf32>
    %c2_102 = arith.constant 2 : index
    %c0_103 = arith.constant 0 : index
    %c0_104 = arith.constant 0 : index
    %97 = vector.load %arg4[%c2_102, %c0_103, %c0_104] : memref<3x8x1xf32, #tpu.memory_space<vmem>>, vector<1x8x1xf32>
    %98 = vector.shape_cast %97 : vector<1x8x1xf32> to vector<8x1xf32>
    %99 = vector.broadcast %98 : vector<8x1xf32> to vector<8x128xf32>
    %100 = arith.addf %96, %99 : vector<8x128xf32>
    %c1_105 = arith.constant 1 : index
    %c0_106 = arith.constant 0 : index
    %c0_107 = arith.constant 0 : index
    %101 = vector.load %arg4[%c1_105, %c0_106, %c0_107] : memref<3x8x1xf32, #tpu.memory_space<vmem>>, vector<1x8x1xf32>
    %102 = vector.shape_cast %101 : vector<1x8x1xf32> to vector<8x1xf32>
    %103 = vector.broadcast %102 : vector<8x1xf32> to vector<8x128xf32>
    %104 = arith.addf %93, %103 : vector<8x128xf32>
    %105 = arith.addf %104, %100 : vector<8x128xf32>
    %cst_108 = arith.constant 0.000000e+00 : f32
    %106 = vector.broadcast %cst_108 : f32 to vector<8x128xf32>
    %107 = arith.maximumf %105, %106 : vector<8x128xf32>
    %c0_109 = arith.constant 0 : index
    %c0_110 = arith.constant 0 : index
    %c0_111 = arith.constant 0 : index
    %108 = vector.load %arg7[%c0_109, %c0_110, %c0_111] : memref<1x8x128xf32, #tpu.memory_space<vmem>>, vector<1x8x128xf32>
    %109 = vector.shape_cast %108 : vector<1x8x128xf32> to vector<8x128xf32>
    %110 = vector.shape_cast %107 : vector<8x128xf32> to vector<1x8x128xf32>
    tpu.vector_store %arg7[%c0_109, %c0_110, %c0_111], %110 {strides = array<i32>} : memref<1x8x128xf32, #tpu.memory_space<vmem>>, vector<1x8x128xf32>,
    %c0_112 = arith.constant 0 : index
    %c0_113 = arith.constant 0 : index
    %c0_114 = arith.constant 0 : index
    %111 = vector.load %arg8[%c0_112, %c0_113, %c0_114] : memref<1x8x128xf32, #tpu.memory_space<vmem>>, vector<1x8x128xf32>
    %112 = vector.shape_cast %111 : vector<1x8x128xf32> to vector<8x128xf32>
    %113 = vector.shape_cast %105 : vector<8x128xf32> to vector<1x8x128xf32>
    tpu.vector_store %arg8[%c0_112, %c0_113, %c0_114], %113 {strides = array<i32>} : memref<1x8x128xf32, #tpu.memory_space<vmem>>, vector<1x8x128xf32>,
    return
  }
  func.func @transform_0(%arg0: i32) -> (i32, i32, i32, i32) {
    %c0_i32 = arith.constant 0 : i32
    %c0_i32_0 = arith.constant 0 : i32
    %c0_i32_1 = arith.constant 0 : i32
    %c0_i32_2 = arith.constant 0 : i32
    return %arg0, %c0_i32, %c0_i32_0, %c0_i32_1 : i32, i32, i32, i32
  }
  func.func @transform_1(%arg0: i32) -> (i32, i32, i32) {
    %c0_i32 = arith.constant 0 : i32
    %c0_i32_0 = arith.constant 0 : i32
    %c0_i32_1 = arith.constant 0 : i32
    %c0_i32_2 = arith.constant 0 : i32
    return %c0_i32, %c0_i32_0, %c0_i32_1 : i32, i32, i32
  }
  func.func @transform_2(%arg0: i32) -> (i32, i32, i32) {
    %c0_i32 = arith.constant 0 : i32
    %c0_i32_0 = arith.constant 0 : i32
    %c0_i32_1 = arith.constant 0 : i32
    %c0_i32_2 = arith.constant 0 : i32
    return %c0_i32, %c0_i32_0, %c0_i32_1 : i32, i32, i32
  }
  func.func @transform_3(%arg0: i32) -> (i32, i32, i32) {
    %c0_i32 = arith.constant 0 : i32
    %c0_i32_0 = arith.constant 0 : i32
    %c0_i32_1 = arith.constant 0 : i32
    %c0_i32_2 = arith.constant 0 : i32
    return %c0_i32, %c0_i32_0, %c0_i32_1 : i32, i32, i32
  }
  func.func @transform_4(%arg0: i32) -> (i32, i32) {
    %c0_i32 = arith.constant 0 : i32
    %c0_i32_0 = arith.constant 0 : i32
    %c0_i32_1 = arith.constant 0 : i32
    return %c0_i32, %c0_i32_0 : i32, i32
  }
  func.func @transform_5(%arg0: i32) -> (i32, i32) {
    %c0_i32 = arith.constant 0 : i32
    %c0_i32_0 = arith.constant 0 : i32
    %c0_i32_1 = arith.constant 0 : i32
    return %c0_i32, %c0_i32_0 : i32, i32
  }
  func.func @transform_6(%arg0: i32) -> (i32, i32, i32) {
    %c0_i32 = arith.constant 0 : i32
    %c0_i32_0 = arith.constant 0 : i32
    %c0_i32_1 = arith.constant 0 : i32
    return %arg0, %c0_i32, %c0_i32_0 : i32, i32, i32
  }
  func.func @transform_7(%arg0: i32) -> (i32, i32, i32) {
    %c0_i32 = arith.constant 0 : i32
    %c0_i32_0 = arith.constant 0 : i32
    %c0_i32_1 = arith.constant 0 : i32
    return %arg0, %c0_i32, %c0_i32_0 : i32, i32, i32
  }
}

</mosaic_0001>

<bundles_post_ra>
// kernel: tpu_custom_call.1
= control target key start
LH: loop header
LB: loop body
LE: loop exit
PB: predicated region body
PF: predicated region fallthrough
CT: control target
= control target key end

     0   :  { %13 = vsyncpa [#allocation5], 0  ;;  %s1057_s26 = smov 120   ;;  %v1058_v2 = vmov 0.0   ;;  %vm55_vm0 = vcmask 1045504   ;;  %vm1059_vm1 = vmmov 0   ;;  %s1268_s0 = inlined_call_operand.vmem [shape: bf16[2,2,12,72], index: 0, kind: input, shape index: {}]   ;;  %s1269_s1 = inlined_call_operand.vmem [shape: bf16[3,8,12], index: 1, kind: input, shape index: {}]   ;;  %s1270_s2 = inlined_call_operand.vmem [shape: bf16[3,8,24], index: 2, kind: input, shape index: {}]   ;;  %s1271_s3 = inlined_call_operand.vmem [shape: f32[3,8,1], index: 3, kind: input, shape index: {}]   ;;  %s1272_s4 = inlined_call_operand.vmem [shape: bf16[4,128], index: 4, kind: input, shape index: {}]   ;;  %s1273_s5 = inlined_call_operand.vmem [shape: bf16[8,4], index: 5, kind: input, shape index: {}]   ;;  %s1274_s6 = inlined_call_operand.hbm [shape: f32[1,8,128], index: 6, kind: output, shape index: {0}]   ;;  %s1275_s7 = inlined_call_operand.hbm [shape: f32[1,8,128], index: 7, kind: output, shape index: {1}]  }
   0x1   :  { %v1001_v0 = vld [vmem:[%s1268_s0] sm:$0x3f]   ;;  %v1002_v1 = vld [vmem:[%s1268_s0 + $0x10] sm:$0x3f]   ;;  %904 = vmatprep.subr.bf16.mxu1 %v1058_v2  ;;  %v1003_v3 = vld [vmem:[%s1268_s0 + $0x8] sm:$0x3f]   ;;  %928 = vmatprep.subr.bf16.mxu0 %v1058_v2 }
   0x2   :  { %152 = vrot.lane.b32.xlu0 %v1001_v0, %s1057_s26  ;;  %906 = vmatprep.mubr.msk.bf16.mxu1 %vm1059_vm1, %v1058_v2  ;;  %v57_v4 = vsel %vm55_vm0, %v1003_v3, 0  ;;  %v331_v5 = vsel %vm55_vm0, %v1002_v1, 0  ;;  %v831_v6 = vld [vmem:[%s1269_s1 + $0x4] sm:$0xf]  ;;  %vm51_vm2 = vcmask 97280   ;;  %v108_v7 = vsel %vm55_vm0, %v1001_v0, 0 }
   0x3   :  { %930 = vmatprep.mubr.msk.bf16.mxu0 %vm1059_vm1, %v1058_v2  ;;  %905 = vmatpush3.bf16.msra.mxu1 %v57_v4 }
   0x4   :  { %910 = vmatprep.subr.bf16.mxu1 %v1058_v2  ;;  %929 = vmatpush3.bf16.msra.mxu0 %v331_v5 }
   0x6   :  { %374 = vrot.lane.b32.xlu0 %v1002_v1, %s1057_s26 }
   0x7   :  { %14 = vsyncpa [#allocation7], 0  ;;  %v266_v8 = vld [vmem:[%s1269_s1] sm:$0xf]  ;;  %940 = vmatprep.subr.bf16.mxu0 %v1058_v2  ;;  %907 = vmatmul.mubr.msk.bf16.vlgmr.msra.gmra.mrb[0].mxu1 %vm51_vm2, %v831_v6  ;;  %v1060_v10 = vmov 0   ;;  %v214_v34 = vlaneseq  ;;  %vm30_vm3 = vcmask 68608  }
   0x8   :  { %911 = vmatpush3.bf16.msra.mxu1 %v108_v7  ;;  %912 = vmatprep.mubr.msk.bf16.mxu1 %vm1059_vm1, %v1058_v2  ;;  %v423_v9 = vld [vmem:[%s1271_s3] sm:$0xff]  ;;  %v1004_v12 = vld [vmem:[%s1268_s0 + $0x18] sm:$0x3f]   ;;  %v836_v15 = vld [vmem:[%s1269_s1 + $0x8] sm:$0xf]  ;;  %vm34_vm4 = vcmask 126008  }
   0x9   :  { %916 = vmatprep.subr.bf16.mxu1 %v1058_v2  ;;  %931 = vmatmul.mubr.msk.bf16.vlgmr.msra.gmra.mrb[0].mxu0 %vm51_vm2, %v266_v8  ;;  %v40_v11 = vld [vmem:[%s1269_s1] sm:$0xf]  ;;  %v280_v16 = vsel %vm55_vm0, %v1004_v12, 0  ;;  %v847_v18 = vld [vmem:[%s1269_s1 + $0x4] sm:$0xf]  ;;  %v215_v35 = vshrl.u32 %v214_v34, 7 }
   0xa   :  { %999 = vset.pattern.permute.xlu1 %v1060_v10  ;;  %944 = vmatprep.mubr.msk.bf16.mxu0 %vm1059_vm1, %v1058_v2  ;;  %v852_v20 = vld [vmem:[%s1269_s1 + $0x8] sm:$0xf]  ;;  %v29_v36 = vld [vmem:[%s1272_s4] sm:$0x2]  ;;  %31 = vst.msk [vmem:[#allocation2] sm:$0xf] %vm30_vm3, %v1060_v10 }
   0xb   :  { %426 = vperm.xlu1 %999, %v423_v9   ;;  %1000 = vset.pattern.permute.xlu0 %v1060_v10  ;;  %v492_v37 = vpack.i.b16 %v29_v36, %v29_v36  ;;  %v496_v38 = vsub.s32 1, %v215_v35  ;;  %32 = vst.msk [vmem:[#allocation2 + $0x8] sm:$0xf] %vm30_vm3, %v1060_v10  ;;  %33 = vst.msk [vmem:[#allocation2 + $0x10] sm:$0xf] %vm30_vm3, %v1060_v10  ;;  %v216_v48 = vsub.s32 0, %v215_v35 }
   0xc   :  { %v28_v41 = vld [vmem:[%s1272_s4] sm:$0x1]  ;;  %s1061_s4 = smov 9   ;;  %36 = vst.msk [vmem:[#allocation2 + $0xc] sm:$0xf] %vm34_vm4, %v1060_v10  ;;  %v639_v7 = vshrl.u32 %v29_v36, 16 }
   0xd   :  { %v1185_v39 = vrot.slane %v492_v37, %v496_v38  ;;  %v211_v42 = vshrl.u32 %v28_v41, 16  ;;  %35 = vst.msk [vmem:[#allocation2 + $0x4] sm:$0xf] %vm34_vm4, %v1060_v10  ;;  %37 = vst.msk [vmem:[#allocation2 + $0x14] sm:$0xf] %vm34_vm4, %v1060_v10  ;;  %v235_v5 = vpack.i.b16 %v28_v41, %v28_v41  ;;  %s1062_s28 = smov 72  }
   0xe   :  { %v640_v12 = vpack.i.b16 %v639_v7, %v639_v7  ;;  %s1063_s29 = smov 8   ;;  %s1064_s30 = smov 73   ;;  %vm225_vm5 = vcmask 592968   ;;  %vm455_vm6 = vcmask 1044032   ;;  %vm456_vm7 = vcmask 64516  }
   0xf   :  { %913 = vmatmul.mubr.msk.bf16.vlgmr.msra.gmra.mrb[4].mxu1 %vm51_vm2, %v40_v11  ;;  %204 = vperm.xlu1 %999, %v423_v9   ;;  %v212_v47 = vpack.i.b16 %v211_v42, %v211_v42  ;;  %v240_v9 = vrot.slane %v235_v5, %v216_v48  ;;  %s1065_s8 = smov 7   ;;  %s1066_s9 = smov 71   ;;  %vm452_vm8 = vcmask 588800   ;;  %vm233_vm9 = vcmask 584768   ;;  %vm457_vm12 = vmor %vm456_vm7, %vm455_vm6  ;;  %v860_v5 = vld [vmem:[%s1270_s2 + $0x4] sm:$0xf] }
  0x10   :  { %918 = vmatprep.mubr.msk.bf16.mxu1 %vm1059_vm1, %v1058_v2  ;;  %v645_v10 = vrot.slane %v640_v12, %v496_v38  ;;  %s1067_s10 = smov 16   ;;  %vm442_vm10 = vcmask 1044040   ;;  %vm443_vm11 = vcmask 72708   ;;  %vm439_vm13 = vcmask 596992   ;;  %s1068_s11 = smov 112  }
  0x11   :  { %v217_v53 = vrot.slane %v212_v47, %v216_v48  ;;  %vm444_vm14 = vmor %vm443_vm11, %vm442_vm10  ;;  %vm248_vm15 = vcmask 576568   ;;  %vm466_vm3 = vcmask 580608   ;;  %v858_v47 = vld.sshfl [vmem:[%s1268_s0 + $0x18] sm:$0x30 pattern:$0x76325410] }
  0x12   :  { %vm261_vm6 = vcmask 517120   ;;  %vm532_vm7 = vcmask 982016   ;;  %vm486_vm10 = vcmask 1041920   ;;  %vm681_vm11 = vcmask 916480   ;;  %s1070_s1 = smov [#allocation6]  }
  0x13   :  { %s817_s27 = sshll.u32 %s1070_s1, 4  ;;  %s818_s27 = int_to_ptr.vmem [resolvable:$true] %s817_s27 }
  0x14   :  { %p1014_p1 = scmp.lt.s32.totalorder %s818_s27, %s818_s27 }
  0x74   :  { %v153_v13 = vpop.permute.xlu0 %152 }
  0x75   :  { %v158_v14 = vsel %vm55_vm0, %v153_v13, 0 }
  0x76   :  { %917 = vmatpush3.bf16.msra.mxu1 %v158_v14 }
  0x77   :  { %922 = vmatprep.subr.bf16.mxu1 %v1058_v2 }
  0x78   :  { %v375_v17 = vpop.permute.xlu0 %374 }
  0x79   :  { %919 = vmatmul.mubr.msk.bf16.vlgmr.msra.gmra.mrb[8].mxu1 %vm51_vm2, %v836_v15  ;;  %v380_v19 = vsel %vm55_vm0, %v375_v17, 0  ;;  %vm469_vm0 = vcmask 1044024  }
  0x7a   :  { %923 = vmatpush3.bf16.msra.mxu1 %v280_v16  ;;  %924 = vmatprep.mubr.msk.bf16.mxu1 %vm1059_vm1, %v1058_v2 }
  0x7b   :  { %934 = vmatprep.subr.bf16.mxu1 %v1058_v2 }
  0x81   :  { %925 = vmatmul.mubr.msk.bf16.vlgmr.msra.gmra.mrb[12].mxu1 %vm51_vm2, %v847_v18  ;;  %v869_v18 = vcombine.low %v645_v10, %v645_v10 }
  0x82   :  { %935 = vmatpush3.bf16.msra.mxu1 %v380_v19  ;;  %936 = vmatprep.mubr.msk.bf16.mxu1 %vm1059_vm1, %v1058_v2 }
  0x89   :  { %937 = vmatmul.mubr.msk.bf16.vlgmr.msra.gmra.mrb[16].mxu1 %vm51_vm2, %v852_v20  ;;  %vm470_vm2 = vcmask 56324  }
  0x8a   :  { %v427_v40 = vpop.permute.xlu1 %426  ;;  %vm471_vm4 = vmor %vm470_vm2, %vm469_vm0 }
  0x8e   :  { %v205_v44 = vpop.permute.xlu1 %204 }
  0xda   :  { %v93_v21 = vpop.f32.mrb[0].mxu1 }
  0xdb   :  { %v908_v22 = vpop.f32.mrb[1].mxu1 }
  0xdc   :  { %v96_v23 = vpop.f32.mrb[2].mxu1  ;;  %v367_v24 = vpop.f32.mrb[0].mxu0 }
  0xdd   :  { %v909_v25 = vpop.f32.mrb[3].mxu1  ;;  %v932_v26 = vpop.f32.mrb[1].mxu0 }
  0xde   :  { %v370_v27 = vpop.f32.mrb[2].mxu0 }
  0xdf   :  { %v933_v28 = vpop.f32.mrb[3].mxu0 }
  0xe2   :  { %v144_v29 = vpop.f32.mrb[4].mxu1 }
  0xe3   :  { %v145_v30 = vadd.f32 %v144_v29, %v93_v21  ;;  %v914_v31 = vpop.f32.mrb[5].mxu1 }
  0xe4   :  { %v147_v32 = vpop.f32.mrb[6].mxu1 }
  0xe5   :  { %v915_v33 = vpop.f32.mrb[7].mxu1 }
 0x14c   :  { %v194_v43 = vpop.f32.mrb[8].mxu1 }
 0x14d   :  { %v200_v45 = vadd.f32 %v194_v43, %v145_v30  ;;  %v920_v46 = vpop.f32.mrb[9].mxu1 }
 0x14e   :  { %v197_v49 = vpop.f32.mrb[10].mxu1 }
 0x14f   :  { %v207_v50 = vadd.f32 %v205_v44, %v200_v45  ;;  %v921_v51 = vpop.f32.mrb[11].mxu1 }
 0x150   :  { %v842_v51 = vld.sshfl [vmem:[%s1268_s0 + $0x8] sm:$0x30 pattern:$0x76325410] }
 0x151   :  { %v208_v52 = vmax.f32 %v207_v50, 0.0  ;;  %v482_v50 = vcombine.high %v858_v47, %v858_v47 }
 0x153   :  { %v209_v54 = vpack.c.bf16 %v208_v52, %v208_v52  ;;  %v259_v52 = vcombine.high %v842_v51, %v842_v51 }
 0x154   :  { %v316_v55 = vpop.f32.mrb[12].mxu1 }
 0x155   :  { %v926_v56 = vpop.f32.mrb[13].mxu1  ;;  %v368_v57 = vadd.f32 %v367_v24, %v316_v55  ;;  %v218_v58 = vmul.bf16 %v217_v53, %v209_v54  ;;  %v241_v14 = vmul.bf16 %v240_v9, %v209_v54  ;;  %262 = vst.msk [vmem:[#allocation3] sm:$0x3] %vm261_vm6, %v259_v52 }
 0x156   :  { %v319_v59 = vpop.f32.mrb[14].mxu1 }
 0x157   :  { %v927_v60 = vpop.f32.mrb[15].mxu1  ;;  %v838_v61 = vcombine.low %v218_v58, %v218_v58  ;;  %v840_v16 = vcombine.low %v241_v14, %v241_v14  ;;  %v859_v59 = vcombine.low %v1185_v39, %v1185_v39  ;;  %v505_v14 = vld [vmem:[%s1270_s2] sm:$0xf] }
 0x159   :  { %222 = vrot.lane.b32.xlu0 %v838_v61, %s1061_s4 }
 0x15c   :  { %v416_v62 = vpop.f32.mrb[16].mxu1 }
 0x15d   :  { %v422_v63 = vadd.f32 %v416_v62, %v368_v57  ;;  %v938_v0 = vpop.f32.mrb[17].mxu1 }
 0x15e   :  { %v419_v1 = vpop.f32.mrb[18].mxu1 }
 0x15f   :  { %v429_v3 = vadd.f32 %v427_v40, %v422_v63  ;;  %v939_v4 = vpop.f32.mrb[19].mxu1 }
 0x161   :  { %v430_v6 = vmax.f32 %v429_v3, 0.0 }
 0x163   :  { %v431_v8 = vpack.c.bf16 %v430_v6, %v430_v6 }
 0x165   :  { %449 = vrot.lane.b32.xlu1 %v431_v8, %s1062_s28  ;;  %v432_v11 = vmul.bf16 %v431_v8, %v217_v53  ;;  %v459_v15 = vmul.bf16 %v431_v8, %v240_v9  ;;  %v878_v53 = vld [vmem:[%s1271_s3 + $0x8] sm:$0xff]  ;;  %s1009_s28 = scalar_lea.vmem %s818_s27, 128 }
 0x166   :  { %p1010_p0 = scmp.ne.s32.totalorder %s818_s27, %s1009_s28  ;;  %p1015_p2 = scmp.lt.s32.totalorder %s1009_s28, %s1009_s28 }
 0x167   :  { %v854_v13 = vcombine.low %v432_v11, %v432_v11  ;;  %v856_v17 = vcombine.low %v459_v15, %v459_v15 }
 0x168   :  { %p1016_p3 = por %p1015_p2, %p1014_p1 }
 0x169   :  { %230 = vrot.lane.b32.xlu1 %v209_v54, %s1063_s29  ;;  %436 = vrot.lane.b32.xlu0 %v854_v13, %s1064_s30  ;;  %v876_v54 = vld [vmem:[%s1271_s3 + $0x10] sm:$0xff] }
 0x16a   :  { %p1017_p4 = pnand %p1016_p3, %p1010_p0 }
 0x16d   :  { %245 = vrot.lane.b32.xlu1 %v840_v16, %s1065_s8  ;;  %463 = vrot.lane.b32.xlu0 %v856_v17, %s1066_s9 }
 0x171   :  { %649 = vrot.lane.b32.xlu0 %v869_v18, %s1067_s10 }
 0x1cb   :  { %v223_v19 = vpop.permute.xlu0 %222 }
 0x1cc   :  { %226 = vst.msk [vmem:[#allocation2] sm:$0xf] %vm225_vm5, %v223_v19  ;;  %vm652_vm5 = vcmask 130048   ;;  %v870_v19 = vld [vmem:[%s1270_s2 + $0x8] sm:$0xf]  ;;  %s1071_s2 = smov [#allocation4]  }
 0x1cd   :  { %s807_s4 = sshll.u32 %s1071_s2, 4  ;;  %s808_s4 = int_to_ptr.vmem [resolvable:$true] %s807_s4 }
 0x1d7   :  { %v450_v20 = vpop.permute.xlu1 %449 }
 0x1d8   :  { %v451_v21 = vrot.slane %v450_v20, 4 }
 0x1da   :  { %v453_v24 = vsel %vm452_vm8, %v451_v21, %v450_v20  ;;  %vm540_vm8 = vcmask 1043456   ;;  %v733_v21 = vld [vmem:[%s1273_s5] sm:$0xf] }
 0x1db   :  { %v231_v22 = vpop.permute.xlu1 %230  ;;  %v437_v23 = vpop.permute.xlu0 %436 }
 0x1dc   :  { %234 = vst.msk [vmem:[#allocation2 + $0x8] sm:$0xf] %vm233_vm9, %v231_v22  ;;  %v438_v25 = vrot.slane %v437_v23, 4  ;;  %vm536_vm9 = vcmask 195584  }
 0x1dd   :  { %458 = vst.msk [vmem:[#allocation2 + $0x8] sm:$0xff] %vm457_vm12, %v453_v24  ;;  %vm745_vm12 = vcmask 1041408  }
 0x1de   :  { %v440_v26 = vsel %vm439_vm13, %v438_v25, %v437_v23  ;;  %vm741_vm13 = vcmask 31744  }
 0x1df   :  { %445 = vst.msk [vmem:[#allocation2] sm:$0xff] %vm444_vm14, %v440_v26  ;;  %v246_v27 = vpop.permute.xlu1 %245  ;;  %v464_v28 = vpop.permute.xlu0 %463 }
 0x1e0   :  { %249 = vst.msk [vmem:[#allocation2 + $0x10] sm:$0xf] %vm248_vm15, %v246_v27  ;;  %v465_v29 = vrot.slane %v464_v28, 4 }
 0x1e2   :  { %v467_v30 = vsel %vm466_vm3, %v465_v29, %v464_v28 }
 0x1e3   :  { %472 = vst.msk [vmem:[#allocation2 + $0x10] sm:$0xff] %vm471_vm4, %v467_v30  ;;  %v650_v31 = vpop.permute.xlu0 %649 }
 0x1e4   :  { %v651_v32 = vrot.slane %v650_v31, 4  ;;  %v507_v34 = vld [vmem:[#allocation2 + $0x8] sm:$0xff] }
 0x1e5   :  { %v489_v63 = vld [vmem:[#allocation2 + $0x8] sm:$0xf] }
 0x1e6   :  { %v506_v33 = vld [vmem:[#allocation2] sm:$0xff]  ;;  %v653_v37 = vsel %vm652_vm5, %v651_v32, %v650_v31  ;;  %v503_v6 = vmul.bf16 %v859_v59, %v489_v63 }
 0x1e7   :  { %v862_v35 = vcombine.high %v506_v33, %v507_v34  ;;  %v861_v36 = vcombine.low %v506_v33, %v507_v34  ;;  %v655_v40 = vmul.bf16 %v653_v37, %v506_v33  ;;  %v656_v41 = vmul.bf16 %v653_v37, %v507_v34  ;;  %v488_v58 = vld [vmem:[#allocation2] sm:$0xf] }
 0x1e8   :  { %v502_v1 = vmul.bf16 %v859_v59, %v488_v58 }
 0x1e9   :  { %526 = vrot.lane.b32.xlu0 %v862_v35, %s1057_s26  ;;  %524 = vrot.lane.b32.xlu1 %v861_v36, %s1057_s26  ;;  %v872_v45 = vcombine.high %v655_v40, %v656_v41  ;;  %v871_v46 = vcombine.low %v655_v40, %v656_v41 }
 0x1ea   :  { %v508_v38 = vld [vmem:[#allocation2 + $0x10] sm:$0xff]  ;;  %v866_v7 = vcombine.low %v502_v1, %v503_v6 }
 0x1eb   :  { %v864_v42 = vcombine.high %v508_v38, %v508_v38  ;;  %v863_v43 = vcombine.low %v508_v38, %v508_v38  ;;  %v657_v44 = vmul.bf16 %v653_v37, %v508_v38  ;;  %v490_v60 = vld [vmem:[#allocation2 + $0x10] sm:$0xf] }
 0x1ec   :  { %v504_v4 = vmul.bf16 %v859_v59, %v490_v60 }
 0x1ed   :  { %530 = vrot.lane.b32.xlu0 %v864_v42, %s1057_s26  ;;  %528 = vrot.lane.b32.xlu1 %v863_v43, %s1057_s26  ;;  %v874_v48 = vcombine.high %v657_v44, %v657_v44  ;;  %v873_v49 = vcombine.low %v657_v44, %v657_v44  ;;  %s1069_s26 = smov 64  }
 0x1ee   :  { %v867_v8 = vcombine.low %v504_v4, %v504_v4 }
 0x1f0   :  { %v597_v12 = vsel %vm540_vm8, %v867_v8, 0 }
 0x1f1   :  { %675 = vrot.lane.b32.xlu0 %v872_v45, %s1068_s11  ;;  %673 = vrot.lane.b32.xlu1 %v871_v46, %s1068_s11 }
 0x1f5   :  { %679 = vrot.lane.b32.xlu0 %v874_v48, %s1068_s11  ;;  %677 = vrot.lane.b32.xlu1 %v873_v49, %s1068_s11 }
 0x1f9   :  { %483 = vrot.lane.b32.xlu1 %v482_v50, %s1069_s26  ;;  %738 = vperm.xlu0 %1000, %v876_v54  }
 0x1fd   :  { %793 = vperm.xlu1 %999, %v878_v53  }
 0x25b   :  { %v525_v55 = vpop.permute.xlu1 %524  ;;  %v527_v56 = vpop.permute.xlu0 %526 }
 0x25c   :  { %v533_v57 = vsel %vm532_vm7, %v525_v55, %v527_v56 }
 0x25d   :  { %941 = vmatpush3.bf16.msra.mxu0 %v533_v57 }
 0x25e   :  { %942 = vmatprep.subr.bf16.mxu0 %v1058_v2 }
 0x25f   :  { %v529_v61 = vpop.permute.xlu1 %528  ;;  %v531_v62 = vpop.permute.xlu0 %530 }
 0x260   :  { %v534_v0 = vsel %vm532_vm7, %v529_v61, %v531_v62 }
 0x261   :  { %v542_v3 = vsel %vm540_vm8, %v534_v0, 0 }
 0x262   :  { %943 = vmatpush3.bf16.msra.mxu0 %v542_v3 }
 0x263   :  { %v674_v39 = vpop.permute.xlu1 %673  ;;  %948 = vmatprep.subr.bf16.mxu0 %v1058_v2  ;;  %v676_v11 = vpop.permute.xlu0 %675 }
 0x264   :  { %v682_v10 = vsel %vm681_vm11, %v674_v39, %v676_v11 }
 0x265   :  { %945 = vmatmul.mubr.msk.bf16.vlgmr.msra.gmra.mrb[4].mxu0 %vm536_vm9, %v860_v5 }
 0x266   :  { %949 = vmatpush3.bf16.msra.mxu0 %v866_v7  ;;  %952 = vmatprep.mubr.msk.bf16.mxu0 %vm1059_vm1, %v1058_v2 }
 0x267   :  { %v678_v9 = vpop.permute.xlu1 %677  ;;  %950 = vmatprep.subr.bf16.mxu0 %v1058_v2  ;;  %v680_v15 = vpop.permute.xlu0 %679 }
 0x268   :  { %v683_v16 = vsel %vm681_vm11, %v678_v9, %v680_v15 }
 0x269   :  { %v689_v17 = vsel %vm540_vm8, %v683_v16, 0 }
 0x26a   :  { %951 = vmatpush3.bf16.msra.mxu0 %v597_v12 }
 0x26b   :  { %956 = vmatprep.subr.bf16.mxu0 %v1058_v2  ;;  %v484_v13 = vpop.permute.xlu1 %483 }
 0x26c   :  { %487 = vst.msk [vmem:[#allocation3] sm:$0x3] %vm486_vm10, %v484_v13 }
 0x271   :  { %953 = vmatmul.mubr.msk.bf16.vlgmr.msra.gmra.mrb[4].mxu0 %vm536_vm9, %v505_v14 }
 0x272   :  { %957 = vmatpush3.bf16.msra.mxu0 %v682_v10  ;;  %960 = vmatprep.mubr.msk.bf16.mxu0 %vm1059_vm1, %v1058_v2 }
 0x273   :  { %958 = vmatprep.subr.bf16.mxu0 %v1058_v2  ;;  %v732_v18 = vld [vmem:[#allocation3] sm:$0x3] }
 0x274   :  { %v747_v20 = vsel %vm745_vm12, %v732_v18, 0 }
 0x276   :  { %959 = vmatpush3.bf16.msra.mxu0 %v689_v17 }
 0x277   :  { %964 = vmatprep.subr.bf16.mxu0 %v1058_v2 }
 0x278   :  { %v739_v22 = vpop.permute.xlu0 %738 }
 0x27c   :  { %v794_v26 = vpop.permute.xlu1 %793 }
 0x27d   :  { %961 = vmatmul.mubr.msk.bf16.vlgmr.msra.gmra.mrb[4].mxu0 %vm536_vm9, %v870_v19 }
 0x27e   :  { %965 = vmatpush3.bf16.msra.mxu0 %v747_v20  ;;  %966 = vmatprep.mubr.msk.bf16.mxu0 %vm1059_vm1, %v1058_v2 }
 0x289   :  { %967 = vmatmul.mubr.msk.bf16.vlgmr.msra.gmra.mrb[4].mxu0 %vm741_vm13, %v733_v21 }
 0x35c   :  { %v783_v23 = vpop.f32.mrb[4].mxu0 }
 0x35d   :  { %v784_v24 = vadd.f32 %v783_v23, %v739_v22  ;;  %v968_v25 = vpop.f32.mrb[5].mxu0 }
 0x35e   :  { %v786_v27 = vpop.f32.mrb[6].mxu0 }
 0x35f   :  { %v971_v28 = vadd.f32 %v794_v26, %v784_v24  ;;  %v969_v29 = vpop.f32.mrb[7].mxu0 }
 0x361   :  { %800 = vst [vmem:[#allocation6] sm:$0xff] %v971_v28  ;;  %v798_v2 = vmax.f32 %v971_v28, 0.0 }
 0x362   :  { %1020 = shalt.err (!%p1017_p4)
}
 0x363   :  { %s1021_s30 = scalar_lea.hbm %s1275_s7, 128 }
 0x364   :  { %p1022_p5 = scmp.ne.s32.totalorder %s1275_s7, %s1021_s30  ;;  %p1025_p6 = scmp.lt.u32.totalorder %s1021_s30, %s1275_s7 }
 0x366   :  { %p1027_p7 = pnand %p1025_p6, %p1022_p5 }
 0x368   :  { %1030 = shalt.err (!%p1027_p7)
}
 0x369   :  { %820 = dma.vmem_to_hbm [thread:$0]  %s818_s27, 128, %s1275_s7, [#allocation7]   ;;  %799 = vst [vmem:[#allocation4] sm:$0xff] %v798_v2 }
 0x36a   :  { %s1031_s14 = scalar_lea.vmem %s808_s4, 128  ;;  %p1036_p9 = scmp.lt.s32.totalorder %s808_s4, %s808_s4 }
 0x36b   :  { %p1032_p8 = scmp.ne.s32.totalorder %s808_s4, %s1031_s14  ;;  %p1037_p10 = scmp.lt.s32.totalorder %s1031_s14, %s1031_s14 }
 0x36d   :  { %p1038_p11 = por %p1037_p10, %p1036_p9 }
 0x36f   :  { %p1039_p12 = pnand %p1038_p11, %p1032_p8 }
 0x371   :  { %1042 = shalt.err (!%p1039_p12)
}
 0x372   :  { %s1043_s16 = scalar_lea.hbm %s1274_s6, 128 }
 0x373   :  { %p1044_p13 = scmp.ne.s32.totalorder %s1274_s6, %s1043_s16  ;;  %p1047_p0 = scmp.lt.u32.totalorder %s1043_s16, %s1274_s6 }
 0x375   :  { %p1049_p1 = pnand %p1047_p0, %p1044_p13 }
 0x377   :  { %1052 = shalt.err (!%p1049_p1)
}
 0x378   :  { %810 = dma.vmem_to_hbm [thread:$0]  %s808_s4, 128, %s1274_s6, [#allocation5]  }
 0x379   :  { %1053 = dma.done.wait [#allocation5], 128  }
 0x37a   :  { %1054 = vsyncadd [#allocation5], 4294967168 }
 0x37b   :  { %1055 = dma.done.wait [#allocation7], 128  }
 0x37c   :  { %1056 = vsyncadd [#allocation7], 4294967168 }
 0x37d   :  { %827 = vsyncpa [#allocation5], 1 }
 0x37e   :  { %828 = vsyncpa [#allocation7], 1 }

</bundles_post_ra>
